<compile_context>
chip_gen: v7x
topology: tpu7x:2x2x1
jax: 0.10.0
libtpu: 0.0.40
codegen_flags: <defaults>
</compile_context>

<pallas_src>
import functools
import math

import jax
import jax.numpy as jnp
from jax.experimental import pallas as pl
from jax.experimental.pallas import tpu as pltpu

_SQRT_2PI = math.sqrt(2.0 * math.pi)
_EPS = 1e-8


def _ica_accum_kernel(x_ref, sum_ref, sumsq_ref, *, tile, d_fold, n_fold,
                      tiles_per_chunk, acc_rows, needs_mask):
    c = pl.program_id(0)          # chunk (parallel) axis
    t = pl.program_id(1)          # batch-tile (reduction) axis

    @pl.when(t == 0)
    def _init():
        sum_ref[...] = jnp.zeros_like(sum_ref)
        sumsq_ref[...] = jnp.zeros_like(sumsq_ref)

    x = x_ref[...].astype(jnp.float32)                      # (tile, d_fold)

    def _accum(xv):
        if acc_rows == 8:
            # Split the sublane axis along its native (8, 128) tiling: the
            # per-step reduction is then pure VPU adds into an (8, d_fold)
            # accumulator; the final 8->1 reduce happens once in the wrapper.
            xr = xv.reshape(tile // 8, 8, d_fold)
            ps = jnp.sum(xr, axis=0)                        # (8, d_fold)
            pss = jnp.sum(xr * xr, axis=0)                  # (8, d_fold)
        else:
            ps = jnp.sum(xv, axis=0, keepdims=True)         # (1, d_fold)
            pss = jnp.sum(xv * xv, axis=0, keepdims=True)
        sum_ref[...] += ps[None]
        sumsq_ref[...] += pss[None]

    if not needs_mask:
        # Steady state: no iota / compare / select in the hot loop.
        _accum(x)
    else:
        is_last = jnp.logical_and(c == pl.num_programs(0) - 1,
                                  t == pl.num_programs(1) - 1)

        @pl.when(jnp.logical_not(is_last))
        def _steady():
            _accum(x)

        @pl.when(is_last)
        def _tail():
            start = (c * tiles_per_chunk + t) * tile
            row = jax.lax.broadcasted_iota(jnp.int32, x.shape, 0) + start
            _accum(jnp.where(row < n_fold, x, 0.0))


def negentropy_ica_loss(x, *, block_bytes=4 << 20):
    """Scalar loss equivalent to NegentropyICALayer()(x) for x of shape (N, D)."""
    n, d = x.shape
    itemsize = jnp.dtype(x.dtype).itemsize

    # ---- Lane folding for small D: (N, D) -> (N//k, k*D), zero-copy reshape.
    if d < 128:
        k0 = min(n, -(-128 // d))                 # ceil(128/d), capped at N
        k = 1
        for cand in range(k0, 0, -1):
            if n % cand == 0:
                k = cand
                break
    else:
        k = 1
    n_fold, d_fold = n // k, k * d
    x_fold = x.reshape(n_fold, d_fold)

    # ---- Byte-based, dtype-aware tile selection (~block_bytes per grid step).
    mult = 8 * max(1, 4 // itemsize)              # 8 (f32) / 16 (bf16) / 32 (i8)
    rows = (block_bytes // (itemsize * d_fold)) // mult * mult
    rows = max(mult, rows)
    tile = n_fold if n_fold <= rows else rows

    num_tiles = -(-n_fold // tile)
    num_chunks = 2 if (num_tiles >= 2 and num_tiles % 2 == 0) else 1
    tiles_per_chunk = num_tiles // num_chunks
    needs_mask = (n_fold % tile) != 0
    acc_rows = 8 if tile % 8 == 0 else 1          # tiny-N fallback

    block_in_bytes = tile * d_fold * itemsize
    vmem_limit = int(min(64 << 20, max(32 << 20, 2 * block_in_bytes + (4 << 20))))

    acc_shape = (num_chunks, acc_rows, d_fold)
    kernel = functools.partial(
        _ica_accum_kernel,
        tile=tile, d_fold=d_fold, n_fold=n_fold,
        tiles_per_chunk=tiles_per_chunk, acc_rows=acc_rows,
        needs_mask=needs_mask)

    cost = pl.CostEstimate(
        flops=3 * n * d,
        transcendentals=0,
        bytes_accessed=n * d * itemsize + 2 * num_chunks * acc_rows * d_fold * 4)

    out_sum, out_sumsq = pl.pallas_call(
        kernel,
        out_shape=(jax.ShapeDtypeStruct(acc_shape, jnp.float32),
                   jax.ShapeDtypeStruct(acc_shape, jnp.float32)),
        grid_spec=pltpu.PrefetchScalarGridSpec(
            num_scalar_prefetch=0,
            grid=(num_chunks, tiles_per_chunk),
            in_specs=[pl.BlockSpec((tile, d_fold),
                                   lambda c, t: (c * tiles_per_chunk + t, 0))],
            out_specs=[pl.BlockSpec((1, acc_rows, d_fold), lambda c, t: (c, 0, 0)),
                       pl.BlockSpec((1, acc_rows, d_fold), lambda c, t: (c, 0, 0))],
        ),
        compiler_params=pltpu.CompilerParams(
            dimension_semantics=("parallel", "arbitrary"),
            vmem_limit_bytes=vmem_limit,
        ),
        cost_estimate=cost,
    )(x_fold)

    # ---- Tiny D-length finalize (pure JAX epilogue): unfold + compute loss.
    sum_d = out_sum.sum(axis=(0, 1)).reshape(k, d).sum(axis=0)       # (D,)
    sumsq_d = out_sumsq.sum(axis=(0, 1)).reshape(k, d).sum(axis=0)   # (D,)
    nf = jnp.float32(n)
    mean = sum_d / nf
    var = (sumsq_d - nf * mean * mean) / (nf - 1.0)
    var = jnp.maximum(var, 0.0)                   # guard fp cancellation
    s = jnp.sqrt(var) + jnp.float32(_EPS)         # std + eps
    term1 = 0.5 * (nf - 1.0) * jnp.sum(var / (s * s))
    term2 = nf * jnp.sum(jnp.log(jnp.float32(_SQRT_2PI) * s))
    return -(term1 + term2)


def _reference_loss(x):
    # Pure-JAX literal transcription of the PyTorch forward.
    x = x.astype(jnp.float32)
    mean = jnp.mean(x, axis=0)
    std = jnp.std(x, axis=0, ddof=1)              # torch.std default: unbiased
    numer = -(x - mean) ** 2
    denom1 = 2.0 * (std + _EPS) ** 2
    denom2 = _SQRT_2PI * (std + _EPS)
    negentropy = -jnp.log(jnp.exp(numer / denom1) / denom2)
    return -jnp.sum(negentropy)


def _check(loss, ref):
    loss = jax.block_until_ready(loss)
    assert jnp.allclose(loss, ref, rtol=1e-4, atol=1e-3), (loss, ref)


if __name__ == "__main__":
    key = jax.random.PRNGKey(0)
    k1, k2, k3, k4 = jax.random.split(key, 4)

    # Docstring-style mini-batch: 10 samples, 6 components (fully lane-folded).
    x1 = jax.random.normal(k1, (10, 6), dtype=jnp.float32)
    _check(negentropy_ica_loss(x1), _reference_loss(x1))

    # Non-zero mean / non-unit scale, partial fold factor, single tile.
    x2 = jax.random.normal(k2, (50, 8), dtype=jnp.float32) * 2.0 + 0.5
    _check(negentropy_ica_loss(x2), _reference_loss(x2))

    # Multi-tile accumulation + ragged last tile (small block forces 3 steps).
    x3 = jax.random.normal(k3, (200, 8), dtype=jnp.float32) * 0.7 - 1.3
    _check(negentropy_ica_loss(x3, block_bytes=4096), _reference_loss(x3))

    # Even tile count -> exercises the 2-chunk 'parallel' core axis.
    x4 = jax.random.normal(k4, (256, 8), dtype=jnp.float32)
    _check(negentropy_ica_loss(x4, block_bytes=2048), _reference_loss(x4))

    print("KERNEL_OK")
</pallas_src>

<mosaic_0001>
module attributes {stable_mosaic.version = 11 : i64} {
  func.func @_ica_accum_kernel(%arg0: i32, %arg1: i32, %arg2: memref<1x60xf32, #tpu.memory_space<vmem>>, %arg3: memref<1x1x60xf32, #tpu.memory_space<vmem>>, %arg4: memref<1x1x60xf32, #tpu.memory_space<vmem>>) attributes {dimension_semantics = [#tpu.dimension_semantics<parallel>, #tpu.dimension_semantics<arbitrary>], iteration_bounds = array<i64: 1, 1>, scalar_prefetch = 0 : i64, scratch_operands = 0 : i64, tpu.core_type = #tpu.core_type<tc>, window_params = [{transform_indices = @transform_0, window_bounds = array<i64: 1, 60>}, {transform_indices = @transform_1, window_bounds = array<i64: 1, 1, 60>}, {transform_indices = @transform_2, window_bounds = array<i64: 1, 1, 60>}]} {
    %c0_i32 = arith.constant 0 : i32
    %0 = arith.cmpi eq, %arg1, %c0_i32 : i32
    %1 = arith.extui %0 : i1 to i32
    %c0_i32_0 = arith.constant 0 : i32
    %2 = arith.cmpi ne, %1, %c0_i32_0 : i32
    scf.if %2 {
      %cst_15 = arith.constant 0.000000e+00 : f32
      %17 = vector.broadcast %cst_15 : f32 to vector<1x1x60xf32>
      %c0_16 = arith.constant 0 : index
      %c0_17 = arith.constant 0 : index
      %c0_18 = arith.constant 0 : index
      %18 = vector.load %arg3[%c0_16, %c0_17, %c0_18] : memref<1x1x60xf32, #tpu.memory_space<vmem>>, vector<1x1x60xf32>
      tpu.vector_store %arg3[%c0_16, %c0_17, %c0_18], %17 {strides = array<i32>} : memref<1x1x60xf32, #tpu.memory_space<vmem>>, vector<1x1x60xf32>,
      %cst_19 = arith.constant 0.000000e+00 : f32
      %19 = vector.broadcast %cst_19 : f32 to vector<1x1x60xf32>
      %c0_20 = arith.constant 0 : index
      %c0_21 = arith.constant 0 : index
      %c0_22 = arith.constant 0 : index
      %20 = vector.load %arg4[%c0_20, %c0_21, %c0_22] : memref<1x1x60xf32, #tpu.memory_space<vmem>>, vector<1x1x60xf32>
      tpu.vector_store %arg4[%c0_20, %c0_21, %c0_22], %19 {strides = array<i32>} : memref<1x1x60xf32, #tpu.memory_space<vmem>>, vector<1x1x60xf32>,
    } else {
    }
    %c0 = arith.constant 0 : index
    %c0_1 = arith.constant 0 : index
    %3 = vector.load %arg2[%c0, %c0_1] : memref<1x60xf32, #tpu.memory_space<vmem>>, vector<1x60xf32>
    %cst = arith.constant dense<0.000000e+00> : vector<60xf32>
    %4 = vector.multi_reduction <add>, %3, %cst [0] : vector<1x60xf32> to vector<60xf32>
    %5 = vector.shape_cast %4 : vector<60xf32> to vector<1x60xf32>
    %6 = arith.mulf %3, %3 : vector<1x60xf32>
    %cst_2 = arith.constant dense<0.000000e+00> : vector<60xf32>
    %7 = vector.multi_reduction <add>, %6, %cst_2 [0] : vector<1x60xf32> to vector<60xf32>
    %8 = vector.shape_cast %7 : vector<60xf32> to vector<1x60xf32>
    %c0_3 = arith.constant 0 : index
    %c0_4 = arith.constant 0 : index
    %c0_5 = arith.constant 0 : index
    %9 = vector.load %arg3[%c0_3, %c0_4, %c0_5] : memref<1x1x60xf32, #tpu.memory_space<vmem>>, vector<1x1x60xf32>
    %10 = vector.shape_cast %5 : vector<1x60xf32> to vector<1x1x60xf32>
    %11 = arith.addf %9, %10 : vector<1x1x60xf32>
    %c0_6 = arith.constant 0 : index
    %c0_7 = arith.constant 0 : index
    %c0_8 = arith.constant 0 : index
    %12 = vector.load %arg3[%c0_6, %c0_7, %c0_8] : memref<1x1x60xf32, #tpu.memory_space<vmem>>, vector<1x1x60xf32>
    tpu.vector_store %arg3[%c0_6, %c0_7, %c0_8], %11 {strides = array<i32>} : memref<1x1x60xf32, #tpu.memory_space<vmem>>, vector<1x1x60xf32>,
    %c0_9 = arith.constant 0 : index
    %c0_10 = arith.constant 0 : index
    %c0_11 = arith.constant 0 : index
    %13 = vector.load %arg4[%c0_9, %c0_10, %c0_11] : memref<1x1x60xf32, #tpu.memory_space<vmem>>, vector<1x1x60xf32>
    %14 = vector.shape_cast %8 : vector<1x60xf32> to vector<1x1x60xf32>
    %15 = arith.addf %13, %14 : vector<1x1x60xf32>
    %c0_12 = arith.constant 0 : index
    %c0_13 = arith.constant 0 : index
    %c0_14 = arith.constant 0 : index
    %16 = vector.load %arg4[%c0_12, %c0_13, %c0_14] : memref<1x1x60xf32, #tpu.memory_space<vmem>>, vector<1x1x60xf32>
    tpu.vector_store %arg4[%c0_12, %c0_13, %c0_14], %15 {strides = array<i32>} : memref<1x1x60xf32, #tpu.memory_space<vmem>>, vector<1x1x60xf32>,
    return
  }
  func.func @transform_0(%arg0: i32, %arg1: i32) -> (i32, i32) {
    %c1_i32 = arith.constant 1 : i32
    %0 = arith.muli %arg0, %c1_i32 : i32
    %1 = arith.addi %0, %arg1 : i32
    %c0_i32 = arith.constant 0 : i32
    %c0_i32_0 = arith.constant 0 : i32
    return %1, %c0_i32 : i32, i32
  }
  func.func @transform_1(%arg0: i32, %arg1: i32) -> (i32, i32, i32) {
    %c0_i32 = arith.constant 0 : i32
    %c0_i32_0 = arith.constant 0 : i32
    %c0_i32_1 = arith.constant 0 : i32
    return %arg0, %c0_i32, %c0_i32_0 : i32, i32, i32
  }
  func.func @transform_2(%arg0: i32, %arg1: i32) -> (i32, i32, i32) {
    %c0_i32 = arith.constant 0 : i32
    %c0_i32_0 = arith.constant 0 : i32
    %c0_i32_1 = arith.constant 0 : i32
    return %arg0, %c0_i32, %c0_i32_0 : i32, i32, i32
  }
}

</mosaic_0001>

<bundles_post_ra>
// kernel: tpu_custom_call.1
= control target key start
LH: loop header
LB: loop body
LE: loop exit
PB: predicated region body
PF: predicated region fallthrough
CT: control target
= control target key end

     0   :  { %8 = vsyncpa [#allocation3], 0  ;;  %s218_s0 = inlined_call_operand.hbm [shape: f32[1,60], index: 0, kind: input, shape index: {}]   ;;  %s219_s1 = inlined_call_operand.hbm [shape: f32[1,1,60], index: 1, kind: output, shape index: {0}]   ;;  %s220_s2 = inlined_call_operand.hbm [shape: f32[1,1,60], index: 2, kind: output, shape index: {1}]  }
   0x1   :  { %9 = vsyncpa [#allocation4], 0 }
   0x2   :  { %10 = vsyncpa [#allocation7], 0  ;;  %s151_s9 = smov [#allocation2]   ;;  %s79_s13 = scalar_lea.hbm %s218_s0, 16 }
   0x3   :  { %s20_s10 = sshll.u32 %s151_s9, 4  ;;  %p80_p0 = scmp.ne.s32.totalorder %s218_s0, %s79_s13  ;;  %s21_s10 = int_to_ptr.vmem [resolvable:$true] %s20_s10 }
   0x4   :  { %p83_p1 = scmp.lt.u32.totalorder %s79_s13, %s218_s0 }
   0x6   :  { %p85_p2 = pnand %p83_p1, %p80_p0 }
   0x8   :  { %88 = shalt.err (!%p85_p2)
}
   0x9   :  { %s89_s18 = scalar_lea.vmem %s21_s10, 16  ;;  %s93_s19 = scalar_lea.vmem %s21_s10, 32 }
   0xa   :  { %p90_p3 = scmp.ne.s32.totalorder %s21_s10, %s89_s18  ;;  %p94_p4 = scmp.lt.s32.totalorder %s21_s10, %s21_s10 }
   0xb   :  { %p95_p5 = scmp.lt.s32.totalorder %s93_s19, %s89_s18 }
   0xd   :  { %p96_p6 = por %p95_p5, %p94_p4 }
   0xf   :  { %p97_p7 = pnand %p96_p6, %p90_p3 }
  0x11   :  { %100 = shalt.err (!%p97_p7)
}
  0x12   :  { %23 = dma.hbm_to_vmem [thread:$0]  %s218_s0, 16, %s21_s10, [#allocation3]  }
  0x13   :  { %145 = dma.done.wait [#allocation3], 16  }
  0x14   :  { %146 = vsyncadd [#allocation3], 4294967280  ;;  %vm32_vm0 = vcmask 483328   ;;  %v152_v0 = vmov 0.0   ;;  %s153_s22 = smov [#allocation5]   ;;  %s154_s24 = smov [#allocation6]  }
  0x15   :  { %33 = vst.msk [vmem:[#allocation5] sm:$0x1] %vm32_vm0, %v152_v0  ;;  %34 = vst.msk [vmem:[#allocation6] sm:$0x1] %vm32_vm0, %v152_v0  ;;  %s52_s23 = sshll.u32 %s153_s22, 4  ;;  %s62_s25 = sshll.u32 %s154_s24, 4  ;;  %s53_s23 = int_to_ptr.vmem [resolvable:$true] %s52_s23  ;;  %s184_s25 = int_to_ptr.vmem [resolvable:$true] %s62_s25 }
  0x16   :  { %v35_v1 = vld [vmem:[#allocation2] sm:$0x1]  ;;  %s101_s0 = scalar_lea.vmem %s53_s23, 16  ;;  %s105_s26 = scalar_lea.vmem %s53_s23, 32 }
  0x17   :  { %v37_v3 = vmul.f32 %v35_v1, %v35_v1  ;;  %p102_p8 = scmp.ne.s32.totalorder %s53_s23, %s101_s0  ;;  %p106_p9 = scmp.lt.s32.totalorder %s53_s23, %s53_s23 }
  0x18   :  { %p107_p10 = scmp.lt.s32.totalorder %s105_s26, %s101_s0 }
  0x1a   :  { %p108_p11 = por %p107_p10, %p106_p9 }
  0x1c   :  { %v39_v2 = vld [vmem:[#allocation5] sm:$0x1]  ;;  %v43_v4 = vld [vmem:[#allocation6] sm:$0x1]  ;;  %p109_p12 = pnand %p108_p11, %p102_p8 }
  0x1d   :  { %v40_v5 = vadd.f32 %v39_v2, %v35_v1  ;;  %v44_v6 = vadd.f32 %v43_v4, %v37_v3 }
  0x1f   :  { %42 = vst.msk [vmem:[#allocation5] sm:$0x1] %vm32_vm0, %v40_v5  ;;  %45 = vst.msk [vmem:[#allocation6] sm:$0x1] %vm32_vm0, %v44_v6 }
  0x20   :  { %112 = shalt.err (!%p109_p12)
}
  0x21   :  { %s113_s29 = scalar_lea.hbm %s219_s1, 16 }
  0x22   :  { %p114_p13 = scmp.ne.s32.totalorder %s219_s1, %s113_s29  ;;  %p117_p0 = scmp.lt.u32.totalorder %s113_s29, %s219_s1 }
  0x24   :  { %p119_p1 = pnand %p117_p0, %p114_p13 }
  0x26   :  { %122 = shalt.err (!%p119_p1)
}
  0x27   :  { %55 = dma.vmem_to_hbm [thread:$0]  %s53_s23, 16, %s219_s1, [#allocation4]  }
  0x28   :  { %s123_s8 = scalar_lea.vmem %s184_s25, 16  ;;  %s127_s9 = scalar_lea.vmem %s184_s25, 32 }
  0x29   :  { %p124_p2 = scmp.ne.s32.totalorder %s184_s25, %s123_s8  ;;  %p128_p3 = scmp.lt.s32.totalorder %s184_s25, %s184_s25 }
  0x2a   :  { %p129_p4 = scmp.lt.s32.totalorder %s127_s9, %s123_s8 }
  0x2c   :  { %p130_p5 = por %p129_p4, %p128_p3 }
  0x2e   :  { %p131_p6 = pnand %p130_p5, %p124_p2 }
  0x30   :  { %134 = shalt.err (!%p131_p6)
}
  0x31   :  { %s135_s12 = scalar_lea.hbm %s220_s2, 16 }
  0x32   :  { %p136_p7 = scmp.ne.s32.totalorder %s220_s2, %s135_s12  ;;  %p139_p8 = scmp.lt.u32.totalorder %s135_s12, %s220_s2 }
  0x34   :  { %p141_p9 = pnand %p139_p8, %p136_p7 }
  0x36   :  { %144 = shalt.err (!%p141_p9)
}
  0x37   :  { %65 = dma.vmem_to_hbm [thread:$0]  %s184_s25, 16, %s220_s2, [#allocation7]  }
  0x38   :  { %147 = dma.done.wait [#allocation4], 16  }
  0x39   :  { %148 = vsyncadd [#allocation4], 4294967280 }
  0x3a   :  { %149 = dma.done.wait [#allocation7], 16  }
  0x3b   :  { %150 = vsyncadd [#allocation7], 4294967280 }
  0x3c   :  { %72 = vsyncpa [#allocation3], 1 }
  0x3d   :  { %73 = vsyncpa [#allocation4], 1 }
  0x3e   :  { %74 = vsyncpa [#allocation7], 1 }

</bundles_post_ra>
